<compile_context>
chip_gen: v6e
topology: v6e:2x2x1
jax: 0.10.0
libtpu: 0.0.40
codegen_flags: <defaults>
</compile_context>

<pallas_src>
import functools
import math

import jax
import jax.numpy as jnp
from jax.experimental import pallas as pl
from jax.experimental.pallas import tpu as pltpu

ALPHA = 1e-05
LANES = 128
ACC_SUB = 8                       # sublane rows of the lane-dense ldj accumulator
MAX_BLOCK_ROWS = 4096             # 4096 * 128 * 4B = 2 MiB per f32 stream block
MAX_BLOCK_BYTES = 2 * 1024 * 1024
TARGET_BLOCK_BYTES = 512 * 1024   # amortize the per-grid-step overhead
MIN_GOOD_TILE_BYTES = 256 * 1024


def _round_up(x, m):
    return (x + m - 1) // m * m


def _choose_row_tiling(rows_aligned, sub):
    """Pick (T, n_tiles, rows_total).

    Prefer a T that divides rows_aligned exactly (no balancing pad).  Only if
    the factorization of rows_aligned is hostile (best divisor tile would be
    tiny) do we pad rows up to a multiple of MAX_BLOCK_ROWS.
    """
    if rows_aligned <= MAX_BLOCK_ROWS:
        return rows_aligned, 1, rows_aligned
    q = rows_aligned // sub
    best = sub
    for t in range(MAX_BLOCK_ROWS // sub, 0, -1):
        if q % t == 0:
            best = t * sub
            break
    if best * LANES * 4 >= MIN_GOOD_TILE_BYTES:
        return best, rows_aligned // best, rows_aligned
    rows_total = _round_up(rows_aligned, MAX_BLOCK_ROWS)
    return MAX_BLOCK_ROWS, rows_total // MAX_BLOCK_ROWS, rows_total


def _layer(z, reverse):
    """Per-element transform.  z is float32, any shape."""
    if not reverse:
        e = jnp.exp(-jnp.abs(z))                     # single exp, reused
        log1pe = jnp.log1p(e)
        sp_negz = jnp.maximum(-z, 0.0) + log1pe      # softplus(-z), stable
        layer_ldj = -z - 2.0 * sp_negz
        denom = 1.0 + e
        r = pl.reciprocal(denom, approx=True)        # EUP vrcp ...
        r = r * (2.0 - denom * r)                    # ... + 1 Newton step (VPU)
        z_out = jnp.where(z >= 0.0, r, e * r)        # sigmoid(z)
    else:
        zp = z * (1.0 - ALPHA) + ALPHA * 0.5
        log_zp = jnp.log(zp)
        log_1mzp = jnp.log1p(-zp)                    # accurate as zp -> 1
        layer_ldj = -log_zp - log_1mzp + math.log(1.0 - ALPHA)
        z_out = log_zp - log_1mzp                    # logit
    return z_out, layer_ldj


def _make_sum_kernel(*, reverse, b_blk, block_rows):
    def kernel(z_ref, zout_ref, acc_ref):
        t = pl.program_id(1)

        @pl.when(t == 0)
        def _():
            acc_ref[...] = jnp.zeros_like(acc_ref)

        z = z_ref[...].astype(jnp.float32)            # (b_blk, T, 128)
        z_out, layer_ldj = _layer(z, reverse)
        zout_ref[...] = z_out.astype(zout_ref.dtype)

        # vreg-wise partial sum: (b_blk, T, 128) -> (b_blk, 8, 128).
        # Layout-preserving reshape (sublane dim split by 8) + pure VPU adds;
        # no cross-lane reduce and no narrow masked stores per grid step.
        partial = layer_ldj.reshape(b_blk, block_rows // ACC_SUB, ACC_SUB, LANES)
        acc_ref[...] += jnp.sum(partial, axis=1)

    return kernel


def _make_elem_kernel(*, reverse):
    def kernel(z_ref, zout_ref, ldj_ref):
        z = z_ref[...].astype(jnp.float32)
        z_out, layer_ldj = _layer(z, reverse)
        zout_ref[...] = z_out.astype(zout_ref.dtype)
        ldj_ref[...] = layer_ldj.astype(ldj_ref.dtype)

    return kernel


@functools.partial(jax.jit, static_argnames=("reverse", "sum_ldj"))
def sigmoid_flow(z, ldj=None, reverse=False, sum_ldj=True):
    """Pallas implementation of SigmoidFlow.forward (reverse_layer=False).

    z: (B, ...) array.  ldj: (B,) or None.
    Returns (z_out with the same shape as z,
             ldj of shape (B,) if sum_ldj else per-element layer_ldj).
    """
    orig_shape = z.shape
    B = orig_shape[0]
    D = math.prod(orig_shape[1:]) if len(orig_shape) > 1 else 1

    if ldj is None:
        ldj = jnp.zeros((B,), dtype=jnp.float32)

    # Sublane multiple depends on element size (f32: 8, bf16: 16, int8/fp8: 32).
    itemsize = jnp.dtype(z.dtype).itemsize
    sub = {4: 8, 2: 16, 1: 32}.get(itemsize, 8)

    rows = -(-D // LANES)                              # ceil(D / 128)
    rows_aligned = _round_up(rows, sub)
    T, n_tiles, rows_total = _choose_row_tiling(rows_aligned, sub)
    D_pad = rows_total * LANES
    has_pad = D_pad != D                               # only genuinely ragged D

    # Batch blocking: amortize per-grid-step overhead when per-batch tiles are
    # small; cap each stream's block at MAX_BLOCK_BYTES (f32 equivalent).
    per_batch_bytes = T * LANES * 4
    b_cap = max(1, MAX_BLOCK_BYTES // per_batch_bytes)
    b_want = max(1, -(-TARGET_BLOCK_BYTES // per_batch_bytes))
    b_blk = int(min(B, b_want, b_cap))
    while B % b_blk:
        b_blk -= 1

    # Pad value chosen so the reverse path stays finite; its constant ldj
    # contribution is subtracted in the wrapper (no in-kernel mask).
    pad_val = 0.5 if reverse else 0.0
    z2d = z.reshape(B, D)
    if has_pad:
        z2d = jnp.pad(z2d, ((0, 0), (0, D_pad - D)), constant_values=pad_val)
    z3d = z2d.reshape(B, rows_total, LANES)

    grid = (B // b_blk, n_tiles)
    z_in_spec = pl.BlockSpec((b_blk, T, LANES), lambda b, t: (b, t, 0))
    z_out_spec = pl.BlockSpec((b_blk, T, LANES), lambda b, t: (b, t, 0))

    if sum_ldj:
        kernel = _make_sum_kernel(reverse=reverse, b_blk=b_blk, block_rows=T)
        out_shape = (
            jax.ShapeDtypeStruct((B, rows_total, LANES), z.dtype),
            jax.ShapeDtypeStruct((B, ACC_SUB, LANES), jnp.float32),
        )
        out_specs = [
            z_out_spec,
            # Lane-dense accumulator, resident across the tile (reduction) axis.
            pl.BlockSpec((b_blk, ACC_SUB, LANES), lambda b, t: (b, 0, 0)),
        ]
        semantics = ("parallel", "arbitrary")
    else:
        kernel = _make_elem_kernel(reverse=reverse)
        out_shape = (
            jax.ShapeDtypeStruct((B, rows_total, LANES), z.dtype),
            jax.ShapeDtypeStruct((B, rows_total, LANES), z.dtype),
        )
        out_specs = [
            z_out_spec,
            pl.BlockSpec((b_blk, T, LANES), lambda b, t: (b, t, 0)),
        ]
        semantics = ("parallel", "parallel")           # fully data-parallel

    z_out_pad, ldj_part = pl.pallas_call(
        kernel,
        out_shape=out_shape,
        grid_spec=pltpu.PrefetchScalarGridSpec(
            num_scalar_prefetch=0,
            grid=grid,
            in_specs=[z_in_spec],
            out_specs=out_specs,
        ),
        compiler_params=pltpu.CompilerParams(
            dimension_semantics=semantics,
            vmem_limit_bytes=48 * 1024 * 1024,
        ),
    )(z3d)

    z_out = z_out_pad.reshape(B, D_pad)
    if has_pad:
        z_out = z_out[:, :D]
    z_out = z_out.reshape(orig_shape)

    if sum_ldj:
        total = ldj_part.reshape(B, -1).sum(axis=1)
        if has_pad:
            # Subtract the constant contribution of the padded tail, computed
            # with the same f32 formulas as the kernel.
            pv = jnp.float32(pad_val)
            if not reverse:
                pad_ldj = -pv - 2.0 * (jnp.maximum(-pv, 0.0)
                                       + jnp.log1p(jnp.exp(-jnp.abs(pv))))
            else:
                zp = pv * (1.0 - ALPHA) + ALPHA * 0.5
                pad_ldj = -jnp.log(zp) - jnp.log1p(-zp) + math.log(1.0 - ALPHA)
            total = total - jnp.float32(D_pad - D) * pad_ldj
        ldj_out = ldj.astype(jnp.float32) + total
    else:
        # PyTorch semantics: ldj = layer_ldj (per-element; input ldj ignored).
        ldj_out = ldj_part.reshape(B, D_pad)
        if has_pad:
            ldj_out = ldj_out[:, :D]
        ldj_out = ldj_out.reshape(orig_shape)
    return z_out, ldj_out


def _reference(z, ldj, reverse=False):
    B = z.shape[0]
    z = z.astype(jnp.float32)
    if not reverse:
        layer_ldj = -z - 2.0 * jax.nn.softplus(-z)
        z_out = jax.nn.sigmoid(z)
    else:
        zp = z * (1.0 - ALPHA) + ALPHA * 0.5
        layer_ldj = -jnp.log(zp) - jnp.log(1.0 - zp) + math.log(1.0 - ALPHA)
        z_out = jnp.log(zp) - jnp.log(1.0 - zp)
    ldj_out = ldj + layer_ldj.reshape(B, -1).sum(axis=1)
    return z_out, ldj_out


if __name__ == "__main__":
    key = jax.random.PRNGKey(0)
    B, C, H, W = 2, 4, 16, 16
    z = jax.random.normal(key, (B, C, H, W), dtype=jnp.float32)
    ldj0 = jnp.zeros((B,), dtype=jnp.float32)

    # Forward (sigmoid) direction.
    z_out, ldj_out = sigmoid_flow(z, ldj0, reverse=False)
    jax.block_until_ready((z_out, ldj_out))
    z_ref, ldj_ref = _reference(z, ldj0, reverse=False)
    assert jnp.allclose(z_out, z_ref, atol=1e-5, rtol=1e-5)
    assert jnp.allclose(ldj_out, ldj_ref, atol=1e-3, rtol=1e-5)

    # Reverse (logit) direction on data in (0, 1).
    z_unit = jax.nn.sigmoid(z)
    z_out_r, ldj_out_r = sigmoid_flow(z_unit, ldj0, reverse=True)
    jax.block_until_ready((z_out_r, ldj_out_r))
    z_ref_r, ldj_ref_r = _reference(z_unit, ldj0, reverse=True)
    assert jnp.allclose(z_out_r, z_ref_r, atol=1e-4, rtol=1e-4)
    assert jnp.allclose(ldj_out_r, ldj_ref_r, atol=1e-2, rtol=1e-4)

    # Non-128-multiple feature size: exercises the (ragged-D) padding path and
    # the wrapper-side padding-constant correction.
    z_odd = jax.random.normal(jax.random.PRNGKey(1), (2, 3, 5, 7),
                              dtype=jnp.float32)
    z_out_o, ldj_out_o = sigmoid_flow(z_odd, None, reverse=False)
    jax.block_until_ready((z_out_o, ldj_out_o))
    z_ref_o, ldj_ref_o = _reference(z_odd, jnp.zeros((2,), jnp.float32),
                                    reverse=False)
    assert z_out_o.shape == z_odd.shape
    assert jnp.allclose(z_out_o, z_ref_o, atol=1e-5, rtol=1e-5)
    assert jnp.allclose(ldj_out_o, ldj_ref_o, atol=1e-3, rtol=1e-5)

    # sum_ldj=False: per-element layer_ldj, PyTorch semantics.
    z_out_e, layer_ldj_e = sigmoid_flow(z, ldj0, reverse=False, sum_ldj=False)
    jax.block_until_ready((z_out_e, layer_ldj_e))
    layer_ldj_ref = -z - 2.0 * jax.nn.softplus(-z)
    assert layer_ldj_e.shape == z.shape
    assert jnp.allclose(layer_ldj_e, layer_ldj_ref, atol=1e-5, rtol=1e-5)

    print("KERNEL_OK")
</pallas_src>

<mosaic_0001>
module attributes {stable_mosaic.version = 11 : i64} {
  func.func @kernel(%arg0: i32, %arg1: i32, %arg2: memref<2x8x128xf32, #tpu.memory_space<vmem>>, %arg3: memref<2x8x128xf32, #tpu.memory_space<vmem>>, %arg4: memref<2x8x128xf32, #tpu.memory_space<vmem>>) attributes {dimension_semantics = [#tpu.dimension_semantics<parallel>, #tpu.dimension_semantics<arbitrary>], iteration_bounds = array<i64: 1, 1>, scalar_prefetch = 0 : i64, scratch_operands = 0 : i64, tpu.core_type = #tpu.core_type<tc>, window_params = [{transform_indices = @transform_0, window_bounds = array<i64: 2, 8, 128>}, {transform_indices = @transform_1, window_bounds = array<i64: 2, 8, 128>}, {transform_indices = @transform_2, window_bounds = array<i64: 2, 8, 128>}]} {
    %c0_i32 = arith.constant 0 : i32
    %0 = arith.cmpi eq, %arg1, %c0_i32 : i32
    %1 = arith.extui %0 : i1 to i32
    %c0_i32_0 = arith.constant 0 : i32
    %2 = arith.cmpi ne, %1, %c0_i32_0 : i32
    scf.if %2 {
      %cst_20 = arith.constant 0.000000e+00 : f32
      %36 = vector.broadcast %cst_20 : f32 to vector<2x8x128xf32>
      %c0_21 = arith.constant 0 : index
      %c0_22 = arith.constant 0 : index
      %c0_23 = arith.constant 0 : index
      %37 = vector.load %arg4[%c0_21, %c0_22, %c0_23] : memref<2x8x128xf32, #tpu.memory_space<vmem>>, vector<2x8x128xf32>
      tpu.vector_store %arg4[%c0_21, %c0_22, %c0_23], %36 {strides = array<i32>} : memref<2x8x128xf32, #tpu.memory_space<vmem>>, vector<2x8x128xf32>,
    } else {
    }
    %c0 = arith.constant 0 : index
    %c0_1 = arith.constant 0 : index
    %c0_2 = arith.constant 0 : index
    %3 = vector.load %arg2[%c0, %c0_1, %c0_2] : memref<2x8x128xf32, #tpu.memory_space<vmem>>, vector<2x8x128xf32>
    %4 = math.absf %3 : vector<2x8x128xf32>
    %cst = arith.constant 0.000000e+00 : f32
    %5 = vector.broadcast %cst : f32 to vector<2x8x128xf32>
    %6 = arith.subf %5, %4 : vector<2x8x128xf32>
    %7 = math.exp %6 : vector<2x8x128xf32>
    %8 = math.log1p %7 : vector<2x8x128xf32>
    %cst_3 = arith.constant 0.000000e+00 : f32
    %9 = vector.broadcast %cst_3 : f32 to vector<2x8x128xf32>
    %10 = arith.subf %9, %3 : vector<2x8x128xf32>
    %cst_4 = arith.constant 0.000000e+00 : f32
    %11 = vector.broadcast %cst_4 : f32 to vector<2x8x128xf32>
    %12 = arith.maximumf %10, %11 : vector<2x8x128xf32>
    %13 = arith.addf %12, %8 : vector<2x8x128xf32>
    %cst_5 = arith.constant 0.000000e+00 : f32
    %14 = vector.broadcast %cst_5 : f32 to vector<2x8x128xf32>
    %15 = arith.subf %14, %3 : vector<2x8x128xf32>
    %cst_6 = arith.constant 2.000000e+00 : f32
    %16 = vector.broadcast %cst_6 : f32 to vector<2x8x128xf32>
    %17 = arith.mulf %16, %13 : vector<2x8x128xf32>
    %18 = arith.subf %15, %17 : vector<2x8x128xf32>
    %cst_7 = arith.constant 1.000000e+00 : f32
    %19 = vector.broadcast %cst_7 : f32 to vector<2x8x128xf32>
    %20 = arith.addf %19, %7 : vector<2x8x128xf32>
    %21 = tpu.reciprocal %20 {approx = true} : vector<2x8x128xf32> -> vector<2x8x128xf32>
    %22 = arith.mulf %20, %21 : vector<2x8x128xf32>
    %cst_8 = arith.constant 2.000000e+00 : f32
    %23 = vector.broadcast %cst_8 : f32 to vector<2x8x128xf32>
    %24 = arith.subf %23, %22 : vector<2x8x128xf32>
    %25 = arith.mulf %21, %24 : vector<2x8x128xf32>
    %cst_9 = arith.constant 0.000000e+00 : f32
    %26 = vector.broadcast %cst_9 : f32 to vector<2x8x128xf32>
    %27 = arith.cmpf oge, %3, %26 : vector<2x8x128xf32>
    %28 = arith.mulf %7, %25 : vector<2x8x128xf32>
    %29 = arith.select %27, %25, %28 : vector<2x8x128xi1>, vector<2x8x128xf32>
    %c0_10 = arith.constant 0 : index
    %c0_11 = arith.constant 0 : index
    %c0_12 = arith.constant 0 : index
    %30 = vector.load %arg3[%c0_10, %c0_11, %c0_12] : memref<2x8x128xf32, #tpu.memory_space<vmem>>, vector<2x8x128xf32>
    tpu.vector_store %arg3[%c0_10, %c0_11, %c0_12], %29 {strides = array<i32>} : memref<2x8x128xf32, #tpu.memory_space<vmem>>, vector<2x8x128xf32>,
    %31 = vector.shape_cast %18 : vector<2x8x128xf32> to vector<2x1x8x128xf32>
    %c0_13 = arith.constant 0 : index
    %c0_14 = arith.constant 0 : index
    %c0_15 = arith.constant 0 : index
    %32 = vector.load %arg4[%c0_13, %c0_14, %c0_15] : memref<2x8x128xf32, #tpu.memory_space<vmem>>, vector<2x8x128xf32>
    %cst_16 = arith.constant dense<0.000000e+00> : vector<2x8x128xf32>
    %33 = vector.multi_reduction <add>, %31, %cst_16 [1] : vector<2x1x8x128xf32> to vector<2x8x128xf32>
    %34 = arith.addf %32, %33 : vector<2x8x128xf32>
    %c0_17 = arith.constant 0 : index
    %c0_18 = arith.constant 0 : index
    %c0_19 = arith.constant 0 : index
    %35 = vector.load %arg4[%c0_17, %c0_18, %c0_19] : memref<2x8x128xf32, #tpu.memory_space<vmem>>, vector<2x8x128xf32>
    tpu.vector_store %arg4[%c0_17, %c0_18, %c0_19], %34 {strides = array<i32>} : memref<2x8x128xf32, #tpu.memory_space<vmem>>, vector<2x8x128xf32>,
    return
  }
  func.func @transform_0(%arg0: i32, %arg1: i32) -> (i32, i32, i32) {
    %c0_i32 = arith.constant 0 : i32
    %c0_i32_0 = arith.constant 0 : i32
    return %arg0, %arg1, %c0_i32 : i32, i32, i32
  }
  func.func @transform_1(%arg0: i32, %arg1: i32) -> (i32, i32, i32) {
    %c0_i32 = arith.constant 0 : i32
    %c0_i32_0 = arith.constant 0 : i32
    return %arg0, %arg1, %c0_i32 : i32, i32, i32
  }
  func.func @transform_2(%arg0: i32, %arg1: i32) -> (i32, i32, i32) {
    %c0_i32 = arith.constant 0 : i32
    %c0_i32_0 = arith.constant 0 : i32
    %c0_i32_1 = arith.constant 0 : i32
    return %arg0, %c0_i32, %c0_i32_0 : i32, i32, i32
  }
}

</mosaic_0001>

<bundles_post_ra>
// kernel: sigmoid_flow.1
= control target key start
LH: loop header
LB: loop body
LE: loop exit
PB: predicated region body
PF: predicated region fallthrough
CT: control target
= control target key end

     0   :  { %s134_s0 = inlined_call_operand.vmem [shape: f32[2,8,128], index: 0, kind: input, shape index: {}]   ;;  %s135_s1 = inlined_call_operand.vmem [shape: f32[2,8,128], index: 1, kind: output, shape index: {0}]   ;;  %s136_s2 = inlined_call_operand.vmem [shape: f32[2,8,128], index: 2, kind: output, shape index: {1}]  }
   0x1   :  { %v16_v0 = vld [vmem:[%s134_s0] sm:$0xff]  ;;  %v17_v1 = vld [vmem:[%s134_s0 + $0x8] sm:$0xff] }
   0x2   :  { %v18_v2 = vand.u32 2147483647, %v16_v0  ;;  %v19_v3 = vand.u32 2147483647, %v17_v1  ;;  %v44_v15 = vsub.f32 0.0, %v16_v0  ;;  %v45_v18 = vsub.f32 0.0, %v17_v1 }
   0x3   :  { %vm64_vm2 = vcmp.ge.f32.partialorder %v16_v0, 0.0  ;;  %vm65_vm3 = vcmp.ge.f32.partialorder %v17_v1, 0.0 }
   0x4   :  { %v20_v4 = vsub.f32 0.0, %v18_v2  ;;  %v21_v5 = vsub.f32 0.0, %v19_v3  ;;  %v46_v22 = vmax.f32 %v44_v15, 0.0  ;;  %v47_v28 = vmax.f32 %v45_v18, 0.0 }
   0x6   :  { %v22_v6 = vmul.f32 1.442695, %v20_v4  ;;  %v24_v7 = vmul.f32 1.442695, %v21_v5 }
   0x8   :  { %89 = vpow2.f32 %v22_v6 }
   0x9   :  { %91 = vpow2.f32 %v24_v7 }
  0x15   :  { %v90_v8 = vpop.eup %89 }
  0x16   :  { %v92_v9 = vpop.eup %91  ;;  %v26_v10 = vadd.f32 1.0, %v90_v8  ;;  %v29_v12 = vmul.f32 -0.5, %v90_v8  ;;  %v32_v16 = vand.u32 2147483647, %v90_v8 }
  0x17   :  { %v35_v11 = vadd.f32 1.0, %v92_v9  ;;  %v38_v13 = vmul.f32 -0.5, %v92_v9  ;;  %v41_v19 = vand.u32 2147483647, %v92_v9 }
  0x18   :  { %93 = vlog2.f32 %v26_v10  ;;  %v30_v14 = vadd.f32 1.0, %v29_v12  ;;  %vm33_vm0 = vcmp.lt.f32.partialorder %v32_v16, 0.0004427343 }
  0x19   :  { %95 = vrcp.f32 %v26_v10  ;;  %v39_v17 = vadd.f32 1.0, %v38_v13  ;;  %vm42_vm1 = vcmp.lt.f32.partialorder %v41_v19, 0.0004427343 }
  0x1a   :  { %97 = vlog2.f32 %v35_v11  ;;  %v31_v20 = vmul.f32 %v90_v8, %v30_v14 }
  0x1b   :  { %99 = vrcp.f32 %v35_v11  ;;  %v40_v25 = vmul.f32 %v92_v9, %v39_v17 }
  0x25   :  { %v94_v21 = vpop.eup %93 }
  0x26   :  { %v96_v23 = vpop.eup %95  ;;  %v28_v24 = vmul.f32 0.6931472, %v94_v21 }
  0x27   :  { %v98_v26 = vpop.eup %97  ;;  %v58_v27 = vmul.f32 %v96_v23, %v26_v10 }
  0x28   :  { %v100_v29 = vpop.eup %99  ;;  %v34_v30 = vsel %vm33_vm0, %v31_v20, %v28_v24  ;;  %v37_v31 = vmul.f32 0.6931472, %v98_v26 }
  0x29   :  { %v60_v32 = vsub.f32 2.0, %v58_v27  ;;  %v59_v33 = vmul.f32 %v100_v29, %v35_v11  ;;  %v48_v34 = vadd.f32 %v46_v22, %v34_v30 }
  0x2a   :  { %v43_v35 = vsel %vm42_vm1, %v40_v25, %v37_v31 }
  0x2b   :  { %v62_v36 = vmul.f32 %v96_v23, %v60_v32  ;;  %v61_v37 = vsub.f32 2.0, %v59_v33  ;;  %v50_v38 = vmul.f32 2.0, %v48_v34  ;;  %v49_v39 = vadd.f32 %v47_v28, %v43_v35 }
  0x2d   :  { %v66_v40 = vmul.f32 %v90_v8, %v62_v36  ;;  %v63_v41 = vmul.f32 %v100_v29, %v61_v37  ;;  %v52_v42 = vsub.f32 %v44_v15, %v50_v38  ;;  %v51_v43 = vmul.f32 2.0, %v49_v39 }
  0x2f   :  { %v68_v44 = vsel %vm64_vm2, %v62_v36, %v66_v40  ;;  %v67_v45 = vmul.f32 %v92_v9, %v63_v41  ;;  %v53_v46 = vsub.f32 %v45_v18, %v51_v43  ;;  %78 = vst [vmem:[%s136_s2] sm:$0xff] %v52_v42 }
  0x30   :  { %70 = vst [vmem:[%s135_s1] sm:$0xff] %v68_v44 }
  0x31   :  { %v69_v47 = vsel %vm65_vm3, %v63_v41, %v67_v45  ;;  %79 = vst [vmem:[%s136_s2 + $0x8] sm:$0xff] %v53_v46 }
  0x32   :  { %71 = vst [vmem:[%s135_s1 + $0x8] sm:$0xff] %v69_v47 }

</bundles_post_ra>
